<compile_context>
chip_gen: v6e
topology: v6e:2x2x1
jax: 0.10.0
libtpu: 0.0.40
codegen_flags: <defaults>
</compile_context>

<pallas_src>
import functools

import jax
import jax.numpy as jnp
from jax import lax
from jax.experimental import pallas as pl
from jax.experimental.pallas import tpu as pltpu


def _shift_zero_fill(x, k):
    """result[..., i] = x[..., i - k], zero-filled.  k is a static Python int."""
    n = x.shape[-1]
    if k == 0:
        return x
    if abs(k) >= n:
        return jnp.zeros_like(x)
    if k > 0:
        pad = jnp.zeros_like(x[..., :k])
        return jnp.concatenate([pad, x[..., : n - k]], axis=-1)
    pad = jnp.zeros_like(x[..., : -k])
    return jnp.concatenate([x[..., -k:], pad], axis=-1)


def _edge_loss_kernel(mask_ref, pred_ref, targ_ref, out_ref, *, W):
    # pred_ref/targ_ref: (1, nb, HW) blocks of flattened (H*W) planes.
    # mask_ref: (2, HW) f32 column-seam masks (1.0 = neighbour is inside the row).
    masks = mask_ref[...]
    mask_l = masks[0:1, :]   # zero where w == 0     (no left neighbour)
    mask_r = masks[1:2, :]   # zero where w == W - 1 (no right neighbour)

    def grad_mag(ref):
        x = ref[0]                                   # (nb, HW), native dtype
        # Neighbour gathers are pure data movement -> keep the narrow dtype.
        xl = _shift_zero_fill(x, 1)                  # x[h, w-1]
        xr = _shift_zero_fill(x, -1)                 # x[h, w+1]
        xu = _shift_zero_fill(x, W)                  # x[h-1, w] (rows zero-filled)
        xd = _shift_zero_fill(x, -W)                 # x[h+1, w]
        f32 = lambda a: a.astype(jnp.float32)
        # Separable Sobel (cross-correlation, zero padding == F.conv2d(padding=1)):
        #   sobel_x = [[1,0,-1],[2,0,-2],[1,0,-1]],  sobel_y = sobel_x.T
        d = f32(xl) * mask_l - f32(xr) * mask_r      # horizontal central diff
        s = f32(xu) - f32(xd)                        # vertical central diff
        gx = _shift_zero_fill(d, W) + 2.0 * d + _shift_zero_fill(d, -W)
        gy = (_shift_zero_fill(s, 1) * mask_l + 2.0 * s
              + _shift_zero_fill(s, -1) * mask_r)
        return jnp.sqrt(gx * gx + gy * gy + 1e-6)

    diff = jnp.abs(grad_mag(pred_ref) - grad_mag(targ_ref))
    # Reduce only over the plane axis here; the cross-lane + cross-block sum is
    # done in the wrapper on the tiny partials array.
    out_ref[0] = jnp.sum(diff, axis=0, keepdims=True)


def edge_aware_loss(pred, target, reduction="mean"):
    """pred, target: NCHW arrays.  L1 loss between Sobel gradient magnitudes
    (matches PyTorch EdgeAwareLoss.forward)."""
    assert pred.shape == target.shape
    B, C, H, W = pred.shape
    BC, HW = B * C, H * W

    if pred.dtype == target.dtype and pred.dtype in (jnp.float32, jnp.bfloat16,
                                                     jnp.float16):
        in_dtype = pred.dtype
    else:
        in_dtype = jnp.float32
    pred = pred.astype(in_dtype)
    target = target.astype(in_dtype)

    # Generation-aware sizing: ~1/4 of physical VMEM as the block working-set
    # budget (capped at 24 MiB), ~3/4 as the scoped limit.
    try:
        vmem_cap = int(getattr(pltpu.get_tpu_info(), "vmem_capacity_bytes",
                               64 * 1024 * 1024))
    except Exception:
        vmem_cap = 64 * 1024 * 1024
    budget = min(24 * 1024 * 1024, vmem_cap // 4)
    vmem_limit = int(min(vmem_cap * 3 // 4, 96 * 1024 * 1024))

    # Planes per grid step: biggest divisor of B*C whose working set (inputs
    # double-buffered + f32 intermediates) fits the budget.  Keep >= 2 grid
    # steps so dimension_semantics=("parallel",) can use both v7x TensorCores.
    itemsize = jnp.dtype(in_dtype).itemsize
    per_plane = HW * (2 * 2 * itemsize + 14 * 4)
    cap = max(1, min(BC, budget // per_plane))
    if BC >= 2:
        cap = min(cap, BC // 2)
    nb = 1
    for div in range(cap, 0, -1):
        if BC % div == 0:
            nb = div
            break
    num_blocks = BC // nb
    # TODO(synk): planes whose working set exceeds the budget need a row-tiled
    # path with a 2-row halo; currently they fall back to one plane per step
    # and may exceed VMEM for very large H*W.

    pred_f = pred.reshape(num_blocks, nb, HW)     # free reshapes, no HBM copies
    targ_f = target.reshape(num_blocks, nb, HW)

    # Column-seam masks (left/right neighbour validity), built once in XLA.
    w_idx = jnp.arange(HW, dtype=jnp.int32) % W
    masks = jnp.stack([(w_idx != 0).astype(jnp.float32),
                       (w_idx != W - 1).astype(jnp.float32)])   # (2, HW)

    kernel = functools.partial(_edge_loss_kernel, W=W)

    partials = pl.pallas_call(
        kernel,
        out_shape=jax.ShapeDtypeStruct((num_blocks, 1, HW), jnp.float32),
        grid=(num_blocks,),
        in_specs=[
            pl.BlockSpec((2, HW), lambda i: (0, 0)),
            pl.BlockSpec((1, nb, HW), lambda i: (i, 0, 0)),
            pl.BlockSpec((1, nb, HW), lambda i: (i, 0, 0)),
        ],
        out_specs=pl.BlockSpec((1, 1, HW), lambda i: (i, 0, 0)),
        compiler_params=pltpu.CompilerParams(
            dimension_semantics=("parallel",),
            vmem_limit_bytes=vmem_limit,
        ),
    )(masks, pred_f, targ_f)

    total = jnp.sum(partials)
    if reduction == "mean":
        return total / jnp.float32(B * C * H * W)
    elif reduction == "sum":
        return total
    else:
        # TODO(synk): reduction='none' would need an elementwise NCHW output.
        raise NotImplementedError(reduction)


def _reference_edge_aware_loss(pred, target):
    """Pure-JAX reference using depthwise conv (mirrors the PyTorch module)."""
    B, C, H, W = pred.shape
    sobel_x = jnp.array([[1, 0, -1], [2, 0, -2], [1, 0, -1]], jnp.float32)
    sobel_y = sobel_x.T

    def grad_mag(img):
        wx = jnp.broadcast_to(sobel_x[None, None], (C, 1, 3, 3))
        wy = jnp.broadcast_to(sobel_y[None, None], (C, 1, 3, 3))
        dn = ("NCHW", "OIHW", "NCHW")
        gx = lax.conv_general_dilated(img, wx, (1, 1), ((1, 1), (1, 1)),
                                      dimension_numbers=dn,
                                      feature_group_count=C)
        gy = lax.conv_general_dilated(img, wy, (1, 1), ((1, 1), (1, 1)),
                                      dimension_numbers=dn,
                                      feature_group_count=C)
        return jnp.sqrt(gx * gx + gy * gy + 1e-6)

    return jnp.mean(jnp.abs(grad_mag(pred) - grad_mag(target)))


if __name__ == "__main__":
    key = jax.random.PRNGKey(0)
    k1, k2 = jax.random.split(key)
    B, C, H, W = 2, 4, 16, 16
    pred = jax.random.normal(k1, (B, C, H, W), dtype=jnp.float32)
    target = jax.random.normal(k2, (B, C, H, W), dtype=jnp.float32)

    loss = edge_aware_loss(pred, target, reduction="mean")
    loss = jax.block_until_ready(loss)

    ref = jax.block_until_ready(_reference_edge_aware_loss(pred, target))
    assert jnp.allclose(loss, ref, rtol=1e-5, atol=1e-5), (loss, ref)

    print("KERNEL_OK")
</pallas_src>

<mosaic_0001>
module attributes {stable_mosaic.version = 11 : i64} {
  func.func @_edge_loss_kernel(%arg0: i32, %arg1: memref<2x256xf32, #tpu.memory_space<vmem>>, %arg2: memref<1x4x256xf32, #tpu.memory_space<vmem>>, %arg3: memref<1x4x256xf32, #tpu.memory_space<vmem>>, %arg4: memref<1x1x256xf32, #tpu.memory_space<vmem>>) attributes {dimension_semantics = [#tpu.dimension_semantics<parallel>], iteration_bounds = array<i64: 2>, scalar_prefetch = 0 : i64, scratch_operands = 0 : i64, tpu.core_type = #tpu.core_type<tc>, window_params = [{pipeline_mode = #tpu.pipeline_mode<synchronous>, transform_indices = @transform_0, window_bounds = array<i64: 2, 256>}, {transform_indices = @transform_1, window_bounds = array<i64: 1, 4, 256>}, {transform_indices = @transform_2, window_bounds = array<i64: 1, 4, 256>}, {transform_indices = @transform_3, window_bounds = array<i64: 1, 1, 256>}]} {
    %c0 = arith.constant 0 : index
    %c0_0 = arith.constant 0 : index
    %0 = vector.load %arg1[%c0, %c0_0] : memref<2x256xf32, #tpu.memory_space<vmem>>, vector<2x256xf32>
    %1 = vector.extract_strided_slice %0 {offsets = [0, 0], sizes = [1, 256], strides = [1, 1]} : vector<2x256xf32> to vector<1x256xf32>
    %2 = vector.extract_strided_slice %0 {offsets = [1, 0], sizes = [1, 256], strides = [1, 1]} : vector<2x256xf32> to vector<1x256xf32>
    %c0_1 = arith.constant 0 : index
    %c0_2 = arith.constant 0 : index
    %c0_3 = arith.constant 0 : index
    %3 = vector.load %arg2[%c0_1, %c0_2, %c0_3] : memref<1x4x256xf32, #tpu.memory_space<vmem>>, vector<1x4x256xf32>
    %4 = vector.shape_cast %3 : vector<1x4x256xf32> to vector<4x256xf32>
    %cst = arith.constant 0.000000e+00 : f32
    %5 = vector.broadcast %cst : f32 to vector<4x1xf32>
    %6 = vector.extract_strided_slice %4 {offsets = [0, 0], sizes = [4, 255], strides = [1, 1]} : vector<4x256xf32> to vector<4x255xf32>
    %7 = tpu.concatenate %5, %6 in 1 : vector<4x1xf32>, vector<4x255xf32> -> vector<4x256xf32>
    %cst_4 = arith.constant 0.000000e+00 : f32
    %8 = vector.broadcast %cst_4 : f32 to vector<4x1xf32>
    %9 = vector.extract_strided_slice %4 {offsets = [0, 1], sizes = [4, 255], strides = [1, 1]} : vector<4x256xf32> to vector<4x255xf32>
    %10 = tpu.concatenate %9, %8 in 1 : vector<4x255xf32>, vector<4x1xf32> -> vector<4x256xf32>
    %cst_5 = arith.constant 0.000000e+00 : f32
    %11 = vector.broadcast %cst_5 : f32 to vector<4x16xf32>
    %12 = vector.extract_strided_slice %4 {offsets = [0, 0], sizes = [4, 240], strides = [1, 1]} : vector<4x256xf32> to vector<4x240xf32>
    %13 = tpu.concatenate %11, %12 in 1 : vector<4x16xf32>, vector<4x240xf32> -> vector<4x256xf32>
    %cst_6 = arith.constant 0.000000e+00 : f32
    %14 = vector.broadcast %cst_6 : f32 to vector<4x16xf32>
    %15 = vector.extract_strided_slice %4 {offsets = [0, 16], sizes = [4, 240], strides = [1, 1]} : vector<4x256xf32> to vector<4x240xf32>
    %16 = tpu.concatenate %15, %14 in 1 : vector<4x240xf32>, vector<4x16xf32> -> vector<4x256xf32>
    %17 = vector.broadcast %1 : vector<1x256xf32> to vector<4x256xf32>
    %18 = arith.mulf %7, %17 : vector<4x256xf32>
    %19 = vector.broadcast %2 : vector<1x256xf32> to vector<4x256xf32>
    %20 = arith.mulf %10, %19 : vector<4x256xf32>
    %21 = arith.subf %18, %20 : vector<4x256xf32>
    %22 = arith.subf %13, %16 : vector<4x256xf32>
    %cst_7 = arith.constant 0.000000e+00 : f32
    %23 = vector.broadcast %cst_7 : f32 to vector<4x16xf32>
    %24 = vector.extract_strided_slice %21 {offsets = [0, 0], sizes = [4, 240], strides = [1, 1]} : vector<4x256xf32> to vector<4x240xf32>
    %25 = tpu.concatenate %23, %24 in 1 : vector<4x16xf32>, vector<4x240xf32> -> vector<4x256xf32>
    %cst_8 = arith.constant 2.000000e+00 : f32
    %26 = vector.broadcast %cst_8 : f32 to vector<4x256xf32>
    %27 = arith.mulf %26, %21 : vector<4x256xf32>
    %28 = arith.addf %25, %27 : vector<4x256xf32>
    %cst_9 = arith.constant 0.000000e+00 : f32
    %29 = vector.broadcast %cst_9 : f32 to vector<4x16xf32>
    %30 = vector.extract_strided_slice %21 {offsets = [0, 16], sizes = [4, 240], strides = [1, 1]} : vector<4x256xf32> to vector<4x240xf32>
    %31 = tpu.concatenate %30, %29 in 1 : vector<4x240xf32>, vector<4x16xf32> -> vector<4x256xf32>
    %32 = arith.addf %28, %31 : vector<4x256xf32>
    %cst_10 = arith.constant 0.000000e+00 : f32
    %33 = vector.broadcast %cst_10 : f32 to vector<4x1xf32>
    %34 = vector.extract_strided_slice %22 {offsets = [0, 0], sizes = [4, 255], strides = [1, 1]} : vector<4x256xf32> to vector<4x255xf32>
    %35 = tpu.concatenate %33, %34 in 1 : vector<4x1xf32>, vector<4x255xf32> -> vector<4x256xf32>
    %36 = vector.broadcast %1 : vector<1x256xf32> to vector<4x256xf32>
    %37 = arith.mulf %35, %36 : vector<4x256xf32>
    %cst_11 = arith.constant 2.000000e+00 : f32
    %38 = vector.broadcast %cst_11 : f32 to vector<4x256xf32>
    %39 = arith.mulf %38, %22 : vector<4x256xf32>
    %40 = arith.addf %37, %39 : vector<4x256xf32>
    %cst_12 = arith.constant 0.000000e+00 : f32
    %41 = vector.broadcast %cst_12 : f32 to vector<4x1xf32>
    %42 = vector.extract_strided_slice %22 {offsets = [0, 1], sizes = [4, 255], strides = [1, 1]} : vector<4x256xf32> to vector<4x255xf32>
    %43 = tpu.concatenate %42, %41 in 1 : vector<4x255xf32>, vector<4x1xf32> -> vector<4x256xf32>
    %44 = vector.broadcast %2 : vector<1x256xf32> to vector<4x256xf32>
    %45 = arith.mulf %43, %44 : vector<4x256xf32>
    %46 = arith.addf %40, %45 : vector<4x256xf32>
    %47 = arith.mulf %32, %32 : vector<4x256xf32>
    %48 = arith.mulf %46, %46 : vector<4x256xf32>
    %49 = arith.addf %47, %48 : vector<4x256xf32>
    %cst_13 = arith.constant 9.99999997E-7 : f32
    %50 = vector.broadcast %cst_13 : f32 to vector<4x256xf32>
    %51 = arith.addf %49, %50 : vector<4x256xf32>
    %52 = math.sqrt %51 : vector<4x256xf32>
    %c0_14 = arith.constant 0 : index
    %c0_15 = arith.constant 0 : index
    %c0_16 = arith.constant 0 : index
    %53 = vector.load %arg3[%c0_14, %c0_15, %c0_16] : memref<1x4x256xf32, #tpu.memory_space<vmem>>, vector<1x4x256xf32>
    %54 = vector.shape_cast %53 : vector<1x4x256xf32> to vector<4x256xf32>
    %cst_17 = arith.constant 0.000000e+00 : f32
    %55 = vector.broadcast %cst_17 : f32 to vector<4x1xf32>
    %56 = vector.extract_strided_slice %54 {offsets = [0, 0], sizes = [4, 255], strides = [1, 1]} : vector<4x256xf32> to vector<4x255xf32>
    %57 = tpu.concatenate %55, %56 in 1 : vector<4x1xf32>, vector<4x255xf32> -> vector<4x256xf32>
    %cst_18 = arith.constant 0.000000e+00 : f32
    %58 = vector.broadcast %cst_18 : f32 to vector<4x1xf32>
    %59 = vector.extract_strided_slice %54 {offsets = [0, 1], sizes = [4, 255], strides = [1, 1]} : vector<4x256xf32> to vector<4x255xf32>
    %60 = tpu.concatenate %59, %58 in 1 : vector<4x255xf32>, vector<4x1xf32> -> vector<4x256xf32>
    %cst_19 = arith.constant 0.000000e+00 : f32
    %61 = vector.broadcast %cst_19 : f32 to vector<4x16xf32>
    %62 = vector.extract_strided_slice %54 {offsets = [0, 0], sizes = [4, 240], strides = [1, 1]} : vector<4x256xf32> to vector<4x240xf32>
    %63 = tpu.concatenate %61, %62 in 1 : vector<4x16xf32>, vector<4x240xf32> -> vector<4x256xf32>
    %cst_20 = arith.constant 0.000000e+00 : f32
    %64 = vector.broadcast %cst_20 : f32 to vector<4x16xf32>
    %65 = vector.extract_strided_slice %54 {offsets = [0, 16], sizes = [4, 240], strides = [1, 1]} : vector<4x256xf32> to vector<4x240xf32>
    %66 = tpu.concatenate %65, %64 in 1 : vector<4x240xf32>, vector<4x16xf32> -> vector<4x256xf32>
    %67 = vector.broadcast %1 : vector<1x256xf32> to vector<4x256xf32>
    %68 = arith.mulf %57, %67 : vector<4x256xf32>
    %69 = vector.broadcast %2 : vector<1x256xf32> to vector<4x256xf32>
    %70 = arith.mulf %60, %69 : vector<4x256xf32>
    %71 = arith.subf %68, %70 : vector<4x256xf32>
    %72 = arith.subf %63, %66 : vector<4x256xf32>
    %cst_21 = arith.constant 0.000000e+00 : f32
    %73 = vector.broadcast %cst_21 : f32 to vector<4x16xf32>
    %74 = vector.extract_strided_slice %71 {offsets = [0, 0], sizes = [4, 240], strides = [1, 1]} : vector<4x256xf32> to vector<4x240xf32>
    %75 = tpu.concatenate %73, %74 in 1 : vector<4x16xf32>, vector<4x240xf32> -> vector<4x256xf32>
    %cst_22 = arith.constant 2.000000e+00 : f32
    %76 = vector.broadcast %cst_22 : f32 to vector<4x256xf32>
    %77 = arith.mulf %76, %71 : vector<4x256xf32>
    %78 = arith.addf %75, %77 : vector<4x256xf32>
    %cst_23 = arith.constant 0.000000e+00 : f32
    %79 = vector.broadcast %cst_23 : f32 to vector<4x16xf32>
    %80 = vector.extract_strided_slice %71 {offsets = [0, 16], sizes = [4, 240], strides = [1, 1]} : vector<4x256xf32> to vector<4x240xf32>
    %81 = tpu.concatenate %80, %79 in 1 : vector<4x240xf32>, vector<4x16xf32> -> vector<4x256xf32>
    %82 = arith.addf %78, %81 : vector<4x256xf32>
    %cst_24 = arith.constant 0.000000e+00 : f32
    %83 = vector.broadcast %cst_24 : f32 to vector<4x1xf32>
    %84 = vector.extract_strided_slice %72 {offsets = [0, 0], sizes = [4, 255], strides = [1, 1]} : vector<4x256xf32> to vector<4x255xf32>
    %85 = tpu.concatenate %83, %84 in 1 : vector<4x1xf32>, vector<4x255xf32> -> vector<4x256xf32>
    %86 = vector.broadcast %1 : vector<1x256xf32> to vector<4x256xf32>
    %87 = arith.mulf %85, %86 : vector<4x256xf32>
    %cst_25 = arith.constant 2.000000e+00 : f32
    %88 = vector.broadcast %cst_25 : f32 to vector<4x256xf32>
    %89 = arith.mulf %88, %72 : vector<4x256xf32>
    %90 = arith.addf %87, %89 : vector<4x256xf32>
    %cst_26 = arith.constant 0.000000e+00 : f32
    %91 = vector.broadcast %cst_26 : f32 to vector<4x1xf32>
    %92 = vector.extract_strided_slice %72 {offsets = [0, 1], sizes = [4, 255], strides = [1, 1]} : vector<4x256xf32> to vector<4x255xf32>
    %93 = tpu.concatenate %92, %91 in 1 : vector<4x255xf32>, vector<4x1xf32> -> vector<4x256xf32>
    %94 = vector.broadcast %2 : vector<1x256xf32> to vector<4x256xf32>
    %95 = arith.mulf %93, %94 : vector<4x256xf32>
    %96 = arith.addf %90, %95 : vector<4x256xf32>
    %97 = arith.mulf %82, %82 : vector<4x256xf32>
    %98 = arith.mulf %96, %96 : vector<4x256xf32>
    %99 = arith.addf %97, %98 : vector<4x256xf32>
    %cst_27 = arith.constant 9.99999997E-7 : f32
    %100 = vector.broadcast %cst_27 : f32 to vector<4x256xf32>
    %101 = arith.addf %99, %100 : vector<4x256xf32>
    %102 = math.sqrt %101 : vector<4x256xf32>
    %103 = arith.subf %52, %102 : vector<4x256xf32>
    %104 = math.absf %103 : vector<4x256xf32>
    %cst_28 = arith.constant dense<0.000000e+00> : vector<256xf32>
    %105 = vector.multi_reduction <add>, %104, %cst_28 [0] : vector<4x256xf32> to vector<256xf32>
    %106 = vector.shape_cast %105 : vector<256xf32> to vector<1x256xf32>
    %c0_29 = arith.constant 0 : index
    %c0_30 = arith.constant 0 : index
    %c0_31 = arith.constant 0 : index
    %107 = vector.load %arg4[%c0_29, %c0_30, %c0_31] : memref<1x1x256xf32, #tpu.memory_space<vmem>>, vector<1x1x256xf32>
    %108 = vector.shape_cast %107 : vector<1x1x256xf32> to vector<1x256xf32>
    %109 = vector.shape_cast %106 : vector<1x256xf32> to vector<1x1x256xf32>
    tpu.vector_store %arg4[%c0_29, %c0_30, %c0_31], %109 {strides = array<i32>} : memref<1x1x256xf32, #tpu.memory_space<vmem>>, vector<1x1x256xf32>,
    return
  }
  func.func @transform_0(%arg0: i32) -> (i32, i32) {
    %c0_i32 = arith.constant 0 : i32
    %c0_i32_0 = arith.constant 0 : i32
    %c0_i32_1 = arith.constant 0 : i32
    return %c0_i32, %c0_i32_0 : i32, i32
  }
  func.func @transform_1(%arg0: i32) -> (i32, i32, i32) {
    %c0_i32 = arith.constant 0 : i32
    %c0_i32_0 = arith.constant 0 : i32
    %c0_i32_1 = arith.constant 0 : i32
    return %arg0, %c0_i32, %c0_i32_0 : i32, i32, i32
  }
  func.func @transform_2(%arg0: i32) -> (i32, i32, i32) {
    %c0_i32 = arith.constant 0 : i32
    %c0_i32_0 = arith.constant 0 : i32
    %c0_i32_1 = arith.constant 0 : i32
    return %arg0, %c0_i32, %c0_i32_0 : i32, i32, i32
  }
  func.func @transform_3(%arg0: i32) -> (i32, i32, i32) {
    %c0_i32 = arith.constant 0 : i32
    %c0_i32_0 = arith.constant 0 : i32
    %c0_i32_1 = arith.constant 0 : i32
    return %arg0, %c0_i32, %c0_i32_0 : i32, i32, i32
  }
}

</mosaic_0001>

<bundles_post_ra>
// kernel: tpu_custom_call.1
= control target key start
LH: loop header
LB: loop body
LE: loop exit
PB: predicated region body
PF: predicated region fallthrough
CT: control target
= control target key end

     0   :  { %8 = vsyncpa [#allocation3], 0  ;;  %s1265_s0 = inlined_call_operand.hbm [shape: f32[2,256], index: 0, kind: input, shape index: {}]   ;;  %s1266_s1 = inlined_call_operand.hbm [shape: f32[2,4,256], index: 1, kind: input, shape index: {}]   ;;  %s1267_s2 = inlined_call_operand.hbm [shape: f32[2,4,256], index: 2, kind: input, shape index: {}]   ;;  %s1268_s3 = inlined_call_operand.hbm [shape: f32[2,1,256], index: 3, kind: output, shape index: {}]  }
   0x1   :  { %9 = vsyncpa [#allocation6], 0 }
   0x2   :  { %11 = vsyncpa [#allocation6 + $0x1], 0 }
   0x3   :  { %12 = vsyncpa [#allocation4], 0 }
   0x4   :  { %14 = vsyncpa [#allocation4 + $0x1], 0  ;;  %s951_s12 = smov 0   ;;  %s953_s13 = smov 0  }
   0x5   :  { %s955_s14 = smov 0   ;;  %s957_s15 = smov 0  }
   0x6 LB: > { %s972_s16 = sadd.s32 1, %s920_s15   ;;  %s48_s17 = sadd.s32 1, %s916_s14  ;;  %s920_s15 = sphi %s957_s15, %s1293_s15   ;;  %s916_s14 = sphi %s955_s14, %s1292_s14   ;;  %s912_s13 = sphi %s953_s13, %s1291_s13   ;;  %s908_s12 = sphi %s951_s12, %s1290_s12  }
   0x7   : > { %s45_s18 = ssub.s32 %s920_s15, %s972_s16  ;;  %p1269_p0 = scmp.ne.s32.totalorder %s916_s14, %s912_s13 }
   0x8   : > { %p46_p1 = scmp.eq.s32.totalorder %s45_s18, 0  ;;  %p56_p2 = scmp.eq.s32.totalorder %s920_s15, 0 }
   0x9   : > { %p719_p4 = scmp.lt.s32.totalorder %s920_s15, 2  ;;  %s148_s20 = sand.u32 1, %s920_s15  }
   0xa   : > { %s983_s19 = scalar_select %p46_p1, %s916_s14, %s48_s17  }
   0xb   : > { %p57_p5 = por %p56_p2, %p1269_p0  ;;  %s150_s21 = sand.u32 1, %s916_s14  }
   0xc   : > { %s990_s22 = sshll.u32 %s150_s21, 3  ;;  %s690_s23 = sshll.u32 %s920_s15, 7 }
   0xd   : > { %s998_s26 = scalar_lea.hbm %s1266_s1, %s690_s23  ;;  %s152_s27 = scalar_lea.vmem [#allocation5], %s990_s22 }
   0xe   : > { %s160_s28 = sshll.u32 %s152_s27, 4  ;;  %p1001_p6 = pnand %p719_p4, %p57_p5  ;;  %s161_s28 = int_to_ptr.vmem [resolvable:$true] %s160_s28 }
   0xf   : > { %s1005_s30 = scalar_lea.sflag [#allocation6], %s148_s20  ;;  %s770_s4 = scalar_lea.hbm %s998_s26, 128 }
  0x10   : > { %p771_p7 = scmp.ne.s32.totalorder %s998_s26, %s770_s4  ;;  %p772_p8 = pneg %p1001_p6 }
  0x11   : > { %s775_s7 = scalar_lea.hbm %s1266_s1, 256  ;;  %p776_p11 = scmp.lt.s32.totalorder %s998_s26, %s1266_s1 }
  0x12   : > { %p773_p9 = pnand %p772_p8, %p771_p7  ;;  %p777_p12 = scmp.lt.s32.totalorder %s775_s7, %s770_s4 }
  0x14   : > { %p774_p10 = pneg %p773_p9  ;;  %p778_p13 = por %p777_p12, %p776_p11 }
  0x16   : > { %p779_p1 = pnand %p778_p13, %p774_p10 }
  0x18   : > { %782 = shalt.err (!%p779_p1)
}
  0x19   : > { %s783_s10 = scalar_lea.vmem %s161_s28, 128  ;;  %s922_s11 = smov [#allocation5]  }
  0x1a   : > { %p784_p2 = scmp.ne.s32.totalorder %s161_s28, %s783_s10  ;;  %s788_s17 = sshll.u32 %s922_s11, 4  ;;  %s789_s17 = int_to_ptr.vmem [resolvable:$false] %s788_s17 }
  0x1b   : > { %s790_s18 = scalar_lea.vmem %s789_s17, 256  ;;  %p791_p7 = scmp.lt.s32.totalorder %s161_s28, %s789_s17 }
  0x1c   : > { %p786_p4 = pnand %p784_p2, %p772_p8  ;;  %p792_p9 = scmp.lt.s32.totalorder %s790_s18, %s783_s10 }
  0x1e   : > { %p787_p5 = pneg %p786_p4  ;;  %p793_p3 = por %p792_p9, %p791_p7 }
  0x20   : > { %p794_p0 = pnand %p793_p3, %p787_p5 }
  0x22   : > { %797 = shalt.err (!%p794_p0)
}
  0x23   : > { %710 = dma.hbm_to_vmem [thread:$0]  (!%p1001_p6), %s998_s26, 128, %s161_s28, %s1005_s30  }
  0x24   : > { %s1029_s20 = sadd.s32 4294967295, %s920_s15   ;;  %s670_s21 = sadd.s32 4294967294, %s920_s15  }
  0x25   : > { %p61_p0 = scmp.ne.s32.totalorder %s912_s13, %s908_s12  ;;  %p1270_p3 = scmp.eq.s32.totalorder %s1029_s20, 0 }
  0x26   : > { %p111_p10 = scmp.eq.s32.totalorder %s1029_s20, 1  ;;  %p117_p11 = scmp.eq.s32.totalorder %s670_s21, 1 }
  0x27   : > { %p1038_p12 = por %p1270_p3, %p61_p0  ;;  %p671_p13 = scmp.ge.s32.totalorder %s920_s15, 1 }
  0x28   : > { %p1277_p1 = scmp.ne.s32.totalorder %s916_s14, %s912_s13  ;;  %p1050_p4 = por %p117_p11, %p61_p0 }
  0x29   : > { %s1276_s24 = scalar_select %p1038_p12, 1, 0 }
  0x2a   : > { %p1046_p2 = por %p111_p10, %p1277_p1  ;;  %p124_p5 = scmp.lt.s32.totalorder %s920_s15, 3 }
  0x2b   : > { %s1279_s26 = scalar_select %p1050_p4, 1, 0 }
  0x2c   : > { %s1278_s25 = scalar_select %p1046_p2, 1, 0 }
  0x2d   : > { %s171_s27 = scalar_lea.vmem [#allocation7], %s990_s22  ;;  %s1061_s6 = scalar_lea.hbm %s1267_s2, %s690_s23 }
  0x2e   : > { %s179_s28 = sshll.u32 %s171_s27, 4  ;;  %p1063_p7 = pnand %p671_p13, %p124_p5  ;;  %s180_s28 = int_to_ptr.vmem [resolvable:$true] %s179_s28 }
  0x2f   : > { %s923_s8 = smov [#allocation2]   ;;  %s798_s22 = scalar_lea.hbm %s1061_s6, 128 }
  0x30   : > { %s1280_s7 = scalar_select %p1063_p7, 1, 0 }
  0x31   : > { %s137_s9 = sshll.u32 %s923_s8, 4  ;;  %p799_p0 = scmp.ne.s32.totalorder %s1061_s6, %s798_s22  ;;  %s138_s9 = int_to_ptr.vmem [resolvable:$true] %s137_s9 }
  0x32   : > { %s803_s11 = scalar_lea.hbm %s1267_s2, 256  ;;  %p804_p13 = scmp.lt.s32.totalorder %s1061_s6, %s1267_s2 }
  0x33   : > { %p801_p10 = pnand %p799_p0, %p772_p8  ;;  %p805_p1 = scmp.lt.s32.totalorder %s803_s11, %s798_s22 }
  0x35   : > { %p802_p11 = pneg %p801_p10  ;;  %p806_p5 = por %p805_p1, %p804_p13 }
  0x37   : > { %p807_p3 = pnand %p806_p5, %p802_p11 }
  0x39   : > { %810 = shalt.err (!%p807_p3)
}
  0x3a   : > { %s811_s21 = scalar_lea.vmem %s180_s28, 128  ;;  %s924_s27 = smov [#allocation7]  }
  0x3b   : > { %p812_p9 = scmp.ne.s32.totalorder %s180_s28, %s811_s21  ;;  %s816_s4 = sshll.u32 %s924_s27, 4  ;;  %s817_s4 = int_to_ptr.vmem [resolvable:$false] %s816_s4 }
  0x3c   : > { %s818_s5 = scalar_lea.vmem %s817_s4, 256  ;;  %p819_p10 = scmp.lt.s32.totalorder %s180_s28, %s817_s4 }
  0x3d   : > { %p814_p4 = pnand %p812_p9, %p772_p8  ;;  %p820_p2 = scmp.lt.s32.totalorder %s818_s5, %s811_s21 }
  0x3f   : > { %p815_p0 = pneg %p814_p4  ;;  %p821_p12 = por %p820_p2, %p819_p10 }
  0x41   : > { %p822_p7 = pnand %p821_p12, %p815_p0 }
  0x43   : > { %825 = shalt.err (!%p822_p7)
}
  0x44   : > { %713 = dma.hbm_to_vmem [thread:$0]  (!%p1001_p6), %s1061_s6, 128, %s180_s28, %s1005_s30  }
  0x45   : > { %p1281_p3 = scmp.eq.s32.totalorder %s1029_s20, 0  ;;  %p1282_p8 = scmp.ne.s32.totalorder %s1280_s7, 0 }
  0x46   : > { %s837_s8 = scalar_lea.vmem %s138_s9, 64  ;;  %p845_p2 = scmp.lt.s32.totalorder %s138_s9, %s138_s9 }
  0x47   : > { %p1283_p4 = pneg %p1282_p8  ;;  %p838_p13 = scmp.ne.s32.totalorder %s138_s9, %s837_s8 }
  0x48   : > { %p846_p12 = scmp.lt.s32.totalorder %s837_s8, %s837_s8 }
  0x49   : > { %p704_p9 = pnand %p1283_p4, %p1281_p3 }
  0x4a   : > { %p847_p7 = por %p846_p12, %p845_p2 }
  0x4b   : > { %p828_p11 = pneg %p704_p9 }
  0x4d   : > { %p840_p1 = pnand %p838_p13, %p828_p11 }
  0x4f   : > { %p841_p5 = pneg %p840_p1 }
  0x51   : > { %p848_p0 = pnand %p847_p7, %p841_p5 }
  0x53   : > { %851 = shalt.err (!%p848_p0)
}
  0x54   : > { %706 = dma.hbm_to_vmem [thread:$0]  (!%p704_p9), %s1265_s0, 64, %s138_s9, [#allocation3]  }
  0x55   : > { %188 = sbr.rel (%p1282_p8) target bundleno = 446 (0x1be), region = 32  ;;  %p1284_p6 = scmp.eq.s32.totalorder (!%p1282_p8), %s1029_s20, 0 }
  0x5a   : > { %895 = dma.done.wait (%p1284_p6), [#allocation3], 64   ;;  %p1285_p10 = pmov %p1284_p6 }
  0x5b   : > { %s194_s30 = sand.u32 1, %s1029_s20   ;;  %s1104_s28 = sand.u32 1, %s912_s13  }
  0x5c   : > { %897 = vsyncadd (%p1285_p10), [#allocation3], 4294967232  ;;  %s682_s6 = sshll.u32 %s1104_s28, 3  ;;  %s195_s23 = scalar_lea.sflag [#allocation6], %s194_s30 }
  0x5d   : > { %s198_s10 = scalar_lea.vmem [#allocation5], %s682_s6  ;;  %p1286_p3 = scmp.ne.s32.totalorder %s1276_s24, 0 }
  0x5f   : > { %899 = dma.done.wait (%p1286_p3), %s195_s23, 256  }
  0x60   : > { %901 = vsyncadd (%p1286_p3), %s195_s23, 4294967040  ;;  %v236_v0 = vld [vmem:[%s198_s10] sm:$0xff]  ;;  %s925_s7 = smov 127   ;;  %s926_s9 = smov 1   ;;  %vm261_vm0 = vcmask 130048   ;;  %vm270_vm1 = vcmask 916480   ;;  %v276_v20 = vlaneseq }
  0x61   : > { %248 = vrot.lane.b32.xlu1 %v236_v0, %s925_s7  ;;  %239 = vrot.lane.b32.xlu0 %v236_v0, %s926_s9  ;;  %v238_v1 = vcombine.high %v236_v0, %v236_v0  ;;  %s927_s11 = smov 16   ;;  %s207_s17 = scalar_lea.vmem [#allocation7], %s682_s6  ;;  %v235_v32 = vld [vmem:[#allocation2] sm:$0xf]  ;;  %vm252_vm2 = vcmask 1039360   ;;  %vm243_vm3 = vcmask 7168  }
  0x62   : > { %v394_v2 = vld [vmem:[%s207_s17] sm:$0xff]  ;;  %s928_s24 = smov 112   ;;  %v1140_v23 = vshrl.u32 %v276_v20, 7  ;;  %vm515_vm12 = vcmask 1043456   ;;  %s684_s18 = sshll.u32 %s1104_s28, 1  ;;  %vm550_vm13 = vcmp.lt.s32.totalorder %v276_v20, 256 }
  0x63   : > { %v396_v3 = vcombine.high %v394_v2, %v394_v2  ;;  %s692_s21 = sshll.u32 %s1029_s20, 5  ;;  %s234_s27 = scalar_lea.vmem [#allocation8], %s684_s18 }
  0x64   : > { %v298_v26 = vsub.s32 1, %v1140_v23  ;;  %v282_v27 = vsub.s32 2, %v1140_v23  ;;  %v278_v28 = vsub.s32 0, %v1140_v23  ;;  %v302_v29 = vsub.s32 3, %v1140_v23  ;;  %s568_s4 = sshll.u32 %s234_s27, 4  ;;  %s566_s29 = scalar_lea.hbm %s1268_s3, %s692_s21  ;;  %s569_s4 = int_to_ptr.vmem [resolvable:$true] %s568_s4 }
  0x65   : > { %257 = vrot.lane.b32.xlu0 %v236_v0, %s927_s11  ;;  %250 = vrot.lane.b32.xlu1 %v238_v1, %s925_s7  ;;  %s554_s22 = scalar_lea.sflag [#allocation4], %s1104_s28  ;;  %s852_s30 = scalar_lea.vmem %s569_s4, 32 }
  0x66   : > { %v299_v37 = vrot.slane %v235_v32, %v298_v26  ;;  %v283_v38 = vrot.slane %v235_v32, %v282_v27  ;;  %v279_v41 = vrot.slane %v235_v32, %v278_v28  ;;  %v303_v42 = vrot.slane %v235_v32, %v302_v29  ;;  %p853_p8 = scmp.ne.s32.totalorder %s569_s4, %s852_s30  ;;  %p1287_p4 = scmp.ne.s32.totalorder %s1278_s25, 0 }
  0x67   : > { %s930_s6 = smov [#allocation8]  }
  0x68   : > { %v1158_v43 = vrot.slane %v299_v37, %v298_v26  ;;  %v1160_v44 = vrot.slane %v283_v38, %v278_v28  ;;  %v1164_v47 = vrot.slane %v279_v41, %v278_v28  ;;  %v1166_v48 = vrot.slane %v303_v42, %v298_v26  ;;  %p854_p9 = pnand %p853_p8, %p1287_p4  ;;  %s856_s20 = sshll.u32 %s930_s6, 4  ;;  %s857_s20 = int_to_ptr.vmem [resolvable:$false] %s856_s20 }
  0x69   : > { %259 = vrot.lane.b32.xlu1 %v238_v1, %s927_s11  ;;  %241 = vrot.lane.b32.xlu0 %v238_v1, %s926_s9  ;;  %s858_s23 = scalar_lea.vmem %s857_s20, 64  ;;  %p859_p13 = scmp.lt.s32.totalorder %s569_s4, %s857_s20 }
  0x6a   : > { %p855_p11 = pneg %p854_p9  ;;  %p860_p1 = scmp.lt.s32.totalorder %s858_s23, %s852_s30 }
  0x6c   : > { %p861_p5 = por %p860_p1, %p859_p13 }
  0x6d   : > { %268 = vrot.lane.b32.xlu1 %v238_v1, %s928_s24  ;;  %266 = vrot.lane.b32.xlu0 %v236_v0, %s928_s24 }
  0x6e   : > { %p862_p2 = pnand %p861_p5, %p855_p11 }
  0x71   : > { %399 = vrot.lane.b32.xlu1 %v396_v3, %s926_s9  ;;  %397 = vrot.lane.b32.xlu0 %v394_v2, %s926_s9 }
  0x75   : > { %407 = vrot.lane.b32.xlu1 %v396_v3, %s925_s7  ;;  %405 = vrot.lane.b32.xlu0 %v394_v2, %s925_s7 }
  0x79   : > { %415 = vrot.lane.b32.xlu1 %v396_v3, %s927_s11  ;;  %413 = vrot.lane.b32.xlu0 %v394_v2, %s927_s11 }
  0x7d   : > { %423 = vrot.lane.b32.xlu1 %v396_v3, %s928_s24  ;;  %421 = vrot.lane.b32.xlu0 %v394_v2, %s928_s24 }
  0xd3   : > { %v249_v4 = vpop.permute.xlu1 %248  ;;  %v240_v5 = vpop.permute.xlu0 %239 }
  0xd4   : > { %v247_v49 = vsel %vm243_vm3, 0.0, %v240_v5 }
  0xd5   : > { %v294_v55 = vmul.f32 %v1164_v47, %v247_v49 }
  0xd7   : > { %v258_v6 = vpop.permute.xlu0 %257  ;;  %v251_v7 = vpop.permute.xlu1 %250 }
  0xd8   : > { %v265_v12 = vsel %vm261_vm0, 0.0, %v258_v6  ;;  %v253_v45 = vsel %vm252_vm2, %v249_v4, %v251_v7  ;;  %v256_v50 = vsel %vm252_vm2, %v251_v7, 0.0 }
  0xd9   : > { %v314_v51 = vmul.f32 %v1158_v43, %v253_v45  ;;  %v315_v56 = vmul.f32 %v1166_v48, %v256_v50 }
  0xdb   : > { %v260_v8 = vpop.permute.xlu1 %259  ;;  %v242_v9 = vpop.permute.xlu0 %241  ;;  %v316_v62 = vsub.f32 %v294_v55, %v314_v51 }
  0xdc   : > { %v262_v13 = vsel %vm261_vm0, %v258_v6, %v260_v8  ;;  %v244_v46 = vsel %vm243_vm3, %v240_v5, %v242_v9 }
  0xdd   : > { %v295_v52 = vmul.f32 %v1160_v44, %v244_v46  ;;  %v330_v38 = vmul.f32 2.0, %v316_v62 }
  0xdf   : > { %v269_v10 = vpop.permute.xlu1 %268  ;;  %v267_v11 = vpop.permute.xlu0 %266  ;;  %v317_v61 = vsub.f32 %v295_v52, %v315_v56 }
  0xe0   : > { %v274_v14 = vsel %vm270_vm1, %v269_v10, 0.0  ;;  %v271_v15 = vsel %vm270_vm1, %v267_v11, %v269_v10 }
  0xe1   : > { %v1131_v16 = vsub.f32 %v262_v13, %v274_v14  ;;  %v1133_v17 = vsub.f32 %v265_v12, %v271_v15  ;;  %v331_v37 = vmul.f32 2.0, %v317_v61 }
  0xe3   : > { %348 = vrot.lane.b32.xlu1 %v1131_v16, %s926_s9  ;;  %v400_v18 = vpop.permute.xlu1 %399  ;;  %346 = vrot.lane.b32.xlu0 %v1133_v17, %s926_s9  ;;  %v398_v19 = vpop.permute.xlu0 %397 }
  0xe4   : > { %v401_v57 = vsel %vm243_vm3, %v398_v19, %v400_v18  ;;  %v404_v58 = vsel %vm243_vm3, 0.0, %v398_v19 }
  0xe5   : > { %v429_v63 = vmul.f32 %v404_v58, %v1164_v47  ;;  %v430_v0 = vmul.f32 %v401_v57, %v1160_v44 }
  0xe7   : > { %v408_v21 = vpop.permute.xlu1 %407  ;;  %v406_v22 = vpop.permute.xlu0 %405 }
  0xe8   : > { %v412_v53 = vsel %vm252_vm2, %v408_v21, 0.0  ;;  %v409_v54 = vsel %vm252_vm2, %v406_v22, %v408_v21  ;;  %v356_v22 = vmul.f32 2.0, %v1133_v17 }
  0xe9   : > { %v432_v59 = vmul.f32 %v412_v53, %v1166_v48  ;;  %v431_v60 = vmul.f32 %v409_v54, %v1158_v43 }
  0xeb   : > { %v416_v24 = vpop.permute.xlu1 %415  ;;  %v414_v25 = vpop.permute.xlu0 %413  ;;  %v434_v1 = vsub.f32 %v430_v0, %v432_v59  ;;  %v433_v2 = vsub.f32 %v429_v63, %v431_v60 }
  0xec   : > { %v417_v33 = vsel %vm261_vm0, %v414_v25, %v416_v24  ;;  %v420_v34 = vsel %vm261_vm0, 0.0, %v414_v25  ;;  %v357_v24 = vmul.f32 2.0, %v1131_v16 }
  0xed   : > { %v447_v56 = vmul.f32 2.0, %v433_v2 }
  0xef   : > { %v424_v30 = vpop.permute.xlu1 %423  ;;  %v422_v31 = vpop.permute.xlu0 %421 }
  0xf0   : > { %v428_v35 = vsel %vm270_vm1, %v424_v30, 0.0  ;;  %v425_v36 = vsel %vm270_vm1, %v422_v31, %v424_v30 }
  0xf1   : > { %v1150_v39 = vsub.f32 %v417_v33, %v428_v35  ;;  %v1152_v40 = vsub.f32 %v420_v34, %v425_v36 }
  0xf3   : > { %465 = vrot.lane.b32.xlu1 %v1150_v39, %s926_s9  ;;  %463 = vrot.lane.b32.xlu0 %v1152_v40, %s926_s9  ;;  %v473_v35 = vmul.f32 2.0, %v1152_v40  ;;  %v474_v36 = vmul.f32 2.0, %v1150_v39 }
  0xf7   : > { %362 = vrot.lane.b32.xlu1 %v1131_v16, %s925_s7  ;;  %360 = vrot.lane.b32.xlu0 %v1133_v17, %s925_s7 }
  0xfb   : > { %479 = vrot.lane.b32.xlu1 %v1150_v39, %s925_s7  ;;  %477 = vrot.lane.b32.xlu0 %v1152_v40, %s925_s7 }
  0xff   : > { %324 = vrot.lane.b32.xlu1 %v317_v61, %s927_s11  ;;  %322 = vrot.lane.b32.xlu0 %v316_v62, %s927_s11 }
 0x103   : > { %441 = vrot.lane.b32.xlu1 %v434_v1, %s927_s11  ;;  %439 = vrot.lane.b32.xlu0 %v433_v2, %s927_s11 }
 0x107   : > { %336 = vrot.lane.b32.xlu1 %v317_v61, %s928_s24  ;;  %334 = vrot.lane.b32.xlu0 %v316_v62, %s928_s24 }
 0x10b   : > { %453 = vrot.lane.b32.xlu1 %v434_v1, %s928_s24  ;;  %451 = vrot.lane.b32.xlu0 %v433_v2, %s928_s24 }
 0x155   : > { %v349_v3 = vpop.permute.xlu1 %348  ;;  %v347_v4 = vpop.permute.xlu0 %346 }
 0x156   : > { %v350_v11 = vsel %vm243_vm3, %v347_v4, %v349_v3  ;;  %v353_v12 = vsel %vm243_vm3, 0.0, %v347_v4 }
 0x157   : > { %v354_v13 = vmul.f32 %v353_v12, %v1164_v47  ;;  %v355_v14 = vmul.f32 %v350_v11, %v1160_v44 }
 0x159   : > { %v358_v27 = vadd.f32 %v356_v22, %v354_v13  ;;  %v359_v28 = vadd.f32 %v357_v24, %v355_v14 }
 0x165   : > { %v466_v5 = vpop.permute.xlu1 %465  ;;  %v464_v6 = vpop.permute.xlu0 %463 }
 0x166   : > { %v467_v29 = vsel %vm243_vm3, %v464_v6, %v466_v5  ;;  %v470_v30 = vsel %vm243_vm3, 0.0, %v464_v6 }
 0x167   : > { %v471_v41 = vmul.f32 %v470_v30, %v1164_v47  ;;  %v472_v42 = vmul.f32 %v467_v29, %v1160_v44  ;;  %v448_v44 = vmul.f32 2.0, %v434_v1 }
 0x169   : > { %v363_v7 = vpop.permute.xlu1 %362  ;;  %v361_v8 = vpop.permute.xlu0 %360  ;;  %v475_v59 = vadd.f32 %v473_v35, %v471_v41 }
 0x16a   : > { %v367_v15 = vsel %vm252_vm2, %v363_v7, 0.0  ;;  %v364_v18 = vsel %vm252_vm2, %v361_v8, %v363_v7 }
 0x16b   : > { %v369_v25 = vmul.f32 %v367_v15, %v1166_v48  ;;  %v368_v26 = vmul.f32 %v364_v18, %v1158_v43 }
 0x16d   : > { %v480_v9 = vpop.permute.xlu1 %479  ;;  %v478_v10 = vpop.permute.xlu0 %477  ;;  %v371_v45 = vadd.f32 %v369_v25, %v359_v28  ;;  %v370_v46 = vadd.f32 %v368_v26, %v358_v27 }
 0x16e   : > { %v484_v33 = vsel %vm252_vm2, %v480_v9, 0.0  ;;  %v481_v34 = vsel %vm252_vm2, %v478_v10, %v480_v9 }
 0x16f   : > { %v486_v49 = vmul.f32 %v484_v33, %v1166_v48  ;;  %v485_v50 = vmul.f32 %v481_v34, %v1158_v43  ;;  %v476_v48 = vadd.f32 %v474_v36, %v472_v42  ;;  %v375_v60 = vmul.f32 %v371_v45, %v371_v45 }
 0x170   : > { %v374_v43 = vmul.f32 %v370_v46, %v370_v46 }
 0x171   : > { %v325_v19 = vpop.permute.xlu1 %324  ;;  %v323_v21 = vpop.permute.xlu0 %322  ;;  %v488_v5 = vadd.f32 %v486_v49, %v476_v48  ;;  %v487_v6 = vadd.f32 %v485_v50, %v475_v59 }
 0x172   : > { %v326_v17 = vsel %vm261_vm0, %v323_v21, %v325_v19  ;;  %v329_v16 = vsel %vm261_vm0, 0.0, %v323_v21 }
 0x173   : > { %v332_v51 = vadd.f32 %v330_v38, %v329_v16  ;;  %v333_v52 = vadd.f32 %v331_v37, %v326_v17  ;;  %v492_v15 = vmul.f32 %v488_v5, %v488_v5  ;;  %v491_v18 = vmul.f32 %v487_v6, %v487_v6 }
 0x175   : > { %v442_v31 = vpop.permute.xlu1 %441  ;;  %v440_v32 = vpop.permute.xlu0 %439 }
 0x176   : > { %v443_v40 = vsel %vm261_vm0, %v440_v32, %v442_v31  ;;  %v446_v39 = vsel %vm261_vm0, 0.0, %v440_v32 }
 0x177   : > { %v449_v61 = vadd.f32 %v447_v56, %v446_v39  ;;  %v450_v62 = vadd.f32 %v448_v44, %v443_v40  ;;  %v929_v56 = vmov 1966171168  }
 0x178   : > { %v534_v44 = vunpack.c.l.s4 %v929_v56 }
 0x179   : > { %v337_v53 = vpop.permute.xlu1 %336  ;;  %v335_v54 = vpop.permute.xlu0 %334 }
 0x17a   : > { %v341_v55 = vsel %vm270_vm1, %v337_v53, 0.0  ;;  %v338_v47 = vsel %vm270_vm1, %v335_v54, %v337_v53 }
 0x17b   : > { %v343_v57 = vadd.f32 %v341_v55, %v333_v52  ;;  %v342_v58 = vadd.f32 %v338_v47, %v332_v51 }
 0x17d   : > { %v373_v63 = vmul.f32 %v343_v57, %v343_v57  ;;  %v372_v0 = vmul.f32 %v342_v58, %v342_v58  ;;  %v454_v3 = vpop.permute.xlu1 %453  ;;  %v452_v4 = vpop.permute.xlu0 %451 }
 0x17e   : > { %v458_v7 = vsel %vm270_vm1, %v454_v3, 0.0  ;;  %v455_v8 = vsel %vm270_vm1, %v452_v4, %v454_v3 }
 0x17f   : > { %v377_v2 = vadd.f32 %v375_v60, %v373_v63  ;;  %v376_v1 = vadd.f32 %v374_v43, %v372_v0  ;;  %v460_v9 = vadd.f32 %v458_v7, %v450_v62  ;;  %v459_v10 = vadd.f32 %v455_v8, %v449_v61 }
 0x180   : > { %v535_v60 = vunpack.c.0.s8 %v534_v44 }
 0x181   : > { %v379_v11 = vadd.f32 1e-06, %v377_v2  ;;  %v378_v12 = vadd.f32 1e-06, %v376_v1  ;;  %v490_v13 = vmul.f32 %v460_v9, %v460_v9  ;;  %v489_v14 = vmul.f32 %v459_v10, %v459_v10 }
 0x182   : > { %v538_v0 = vsub.s32 %v535_v60, %v1140_v23 }
 0x183   : > { %762 = vrsqrt.f32 %v379_v11  ;;  %v494_v19 = vadd.f32 %v492_v15, %v490_v13  ;;  %v493_v21 = vadd.f32 %v491_v18, %v489_v14  ;;  %vm389_vm4 = vcmp.eq.f32.partialorder %v379_v11, inf }
 0x184   : > { %764 = vrsqrt.f32 %v378_v12  ;;  %vm391_vm5 = vcmp.eq.f32.partialorder %v379_v11, 0.0  ;;  %v392_v30 = vand.u32 2147483648, %v379_v11  ;;  %vm382_vm6 = vcmp.eq.f32.partialorder %v378_v12, inf }
 0x185   : > { %v496_v22 = vadd.f32 1e-06, %v494_v19  ;;  %v495_v24 = vadd.f32 1e-06, %v493_v21  ;;  %vm384_vm7 = vcmp.eq.f32.partialorder %v378_v12, 0.0  ;;  %v385_v33 = vand.u32 2147483648, %v378_v12 }
 0x187   : > { %766 = vrsqrt.f32 %v496_v22  ;;  %vm506_vm8 = vcmp.eq.f32.partialorder %v496_v22, inf  ;;  %v509_v16 = vand.u32 2147483648, %v496_v22  ;;  %vm508_vm9 = vcmp.eq.f32.partialorder %v496_v22, 0.0 }
 0x188   : > { %768 = vrsqrt.f32 %v495_v24  ;;  %vm499_vm10 = vcmp.eq.f32.partialorder %v495_v24, inf  ;;  %v502_v37 = vand.u32 2147483648, %v495_v24  ;;  %vm501_vm11 = vcmp.eq.f32.partialorder %v495_v24, 0.0 }
 0x190   : > { %v763_v25 = vpop.eup %762 }
 0x191   : > { %v765_v26 = vpop.eup %764  ;;  %v388_v27 = vmul.f32 %v763_v25, %v379_v11 }
 0x192   : > { %v381_v28 = vmul.f32 %v765_v26, %v378_v12 }
 0x193   : > { %v390_v32 = vsel %vm389_vm4, %v379_v11, %v388_v27 }
 0x194   : > { %v767_v29 = vpop.eup %766  ;;  %v383_v17 = vsel %vm382_vm6, %v378_v12, %v381_v28  ;;  %v393_v38 = vsel %vm391_vm5, %v392_v30, %v390_v32 }
 0x195   : > { %v769_v31 = vpop.eup %768  ;;  %v505_v34 = vmul.f32 %v767_v29, %v496_v22  ;;  %v386_v45 = vsel %vm384_vm7, %v385_v33, %v383_v17 }
 0x196   : > { %v498_v35 = vmul.f32 %v769_v31, %v495_v24 }
 0x197   : > { %v507_v36 = vsel %vm506_vm8, %v496_v22, %v505_v34 }
 0x198   : > { %v510_v41 = vsel %vm508_vm9, %v509_v16, %v507_v36  ;;  %v500_v42 = vsel %vm499_vm10, %v495_v24, %v498_v35 }
 0x199   : > { %v512_v46 = vsub.f32 %v393_v38, %v510_v41  ;;  %v503_v49 = vsel %vm501_vm11, %v502_v37, %v500_v42 }
 0x19a   : > { %v511_v50 = vsub.f32 %v386_v45, %v503_v49 }
 0x19b   : > { %v514_v51 = vand.u32 2147483647, %v512_v46 }
 0x19c   : > { %v513_v52 = vand.u32 2147483647, %v511_v50 }
 0x19d   : > { %v523_v53 = vsel %vm515_vm12, %v514_v51, 0.0 }
 0x19e   : > { %v516_v54 = vsel %vm515_vm12, %v513_v52, 0.0  ;;  %v524_v40 = vrot.slane %v523_v53, 4 }
 0x19f   : > { %v517_v39 = vrot.slane %v516_v54, 4 }
 0x1a0   : > { %v525_v55 = vadd.f32 %v524_v40, %v523_v53 }
 0x1a1   : > { %v518_v47 = vadd.f32 %v517_v39, %v516_v54 }
 0x1a2   : > { %v526_v57 = vrot.slane %v525_v55, 2 }
 0x1a3   : > { %v519_v58 = vrot.slane %v518_v47, 2 }
 0x1a4   : > { %v527_v59 = vadd.f32 %v526_v57, %v525_v55 }
 0x1a5   : > { %v520_v48 = vadd.f32 %v519_v58, %v518_v47 }
 0x1a6   : > { %v528_v43 = vrot.slane %v527_v59, 1 }
 0x1a7   : > { %v521_v61 = vrot.slane %v520_v48, 1 }
 0x1a8   : > { %v529_v62 = vadd.f32 %v528_v43, %v527_v59 }
 0x1a9   : > { %v522_v63 = vadd.f32 %v521_v61, %v520_v48 }
 0x1ab   : > { %v532_v3 = vcombine.low %v522_v63, %v529_v62 }
 0x1ad   : > { %v539_v4 = vrot.slane %v532_v3, %v538_v0 }
 0x1af   : > { %v546_v5 = vrot.slane %v539_v4, %v538_v0 }
 0x1b1   : > { %552 = vst.msk [vmem:[%s234_s27] sm:$0x3] %vm550_vm13, %v546_v5 }
 0x1b2   : > { %865 = shalt.err (!%p862_p2)
}
 0x1b3   : > { %s866_s10 = scalar_lea.hbm %s566_s29, 32  ;;  %s870_s9 = scalar_lea.hbm %s1268_s3, 64 }
 0x1b4   : > { %p867_p12 = scmp.ne.s32.totalorder %s566_s29, %s866_s10  ;;  %p871_p6 = scmp.lt.s32.totalorder %s566_s29, %s1268_s3 }
 0x1b5   : > { %p872_p10 = scmp.lt.s32.totalorder %s870_s9, %s866_s10 }
 0x1b6   : > { %p868_p7 = pnand %p867_p12, %p1287_p4 }
 0x1b7   : > { %p873_p3 = por %p872_p10, %p871_p6 }
 0x1b8   : > { %p869_p0 = pneg %p868_p7 }
 0x1ba   : > { %p874_p8 = pnand %p873_p3, %p869_p0 }
 0x1bc   : > { %877 = shalt.err (!%p874_p8)
}
 0x1bd   : > { %701 = dma.vmem_to_hbm [thread:$0]  (%p1287_p4), %s569_s4, 32, %s566_s29, %s554_s22  }
 0x1be PF: > { %s580_s24 = sand.u32 1, %s908_s12   ;;  %p1288_p9 = scmp.ne.s32.totalorder %s1279_s26, 0 }
 0x1bf   : > { %p1289_p11 = scmp.ge.s32.totalorder %s920_s15, 2  ;;  %s581_s18 = scalar_lea.sflag [#allocation4], %s580_s24 }
 0x1c1   : > { %p715_p13 = pnand %p1289_p11, %p1288_p9 }
 0x1c3   : > { %p716_p1 = pneg %p715_p13 }
 0x1c5   : > { %903 = dma.done.wait (%p716_p1), %s581_s18, 32  }
 0x1c6   : > { %905 = vsyncadd (%p716_p1), %s581_s18, 4294967264  ;;  %p17_p5 = scmp.ge.s32.totalorder %s972_s16, 4   ;;  %s1290_s12 = smov %s912_s13 }
 0x1c7   : > { %s1291_s13 = smov %s916_s14  ;;  %s1292_s14 = smov %s983_s19 }
 0x1c8   : > { %s1293_s15 = smov %s972_s16  ;;  %19 = sbr.rel (!%p17_p5) target bundleno = 6 (0x6), region = 93 }
 0x1cd   :  { %586 = vsyncpa [#allocation3], 1 }
 0x1ce   :  { %588 = vsyncpa [#allocation3 + $0x1], 1 }
 0x1cf   :  { %589 = vsyncpa [#allocation6], 1 }
 0x1d0   :  { %591 = vsyncpa [#allocation6 + $0x1], 1 }
 0x1d1   :  { %592 = vsyncpa [#allocation4], 1 }
 0x1d2   :  { %594 = vsyncpa [#allocation4 + $0x1], 1 }

</bundles_post_ra>
